<compile_context>
chip_gen: v5e
topology: v5e:2x2
jax: 0.10.0
libtpu: 0.0.40
codegen_flags: <defaults>
</compile_context>

<pallas_src>
import functools

import jax
import jax.numpy as jnp
from jax.experimental import pallas as pl
from jax.experimental.pallas import tpu as pltpu

LANE = 128
_TARGET_BLOCK_BYTES = 4 * 1024 * 1024   # elementwise roofline plateau ~1-4 MiB tiles
_VMEM_LIMIT_BYTES = 32 * 1024 * 1024    # 2 bufs x (in+out) x 4 MiB = 16 MiB + headroom


def _sqrt_relu_kernel(x_ref, o_ref, *, compute_dtype):
    x = x_ref[...].astype(compute_dtype)
    zero = jnp.asarray(0.0, dtype=compute_dtype)
    one = jnp.asarray(1.0, dtype=compute_dtype)
    o_ref[...] = jnp.sqrt(jnp.maximum(x, zero) + one).astype(o_ref.dtype)


def _min_sublane(dtype) -> int:
    itemsize = jnp.dtype(dtype).itemsize
    if itemsize >= 4:
        return 8
    if itemsize == 2:
        return 16
    return 32


def _compute_dtype_for(dtype):
    """bf16-native on chips with bf16 VPU/EUP (v6e/v7x); f32 otherwise (v5e/unknown)."""
    dtype = jnp.dtype(dtype)
    if dtype == jnp.dtype(jnp.bfloat16):
        try:
            kind = jax.devices()[0].device_kind.lower()
        except Exception:
            kind = ""
        if ("v6" in kind) or ("v7" in kind):
            return jnp.bfloat16
    return jnp.float32


def _run_lane_dense(x2d, *, donate_input=False):
    """Run the kernel over a (rows, W) lane-dense slab; W is a multiple of 128."""
    rows, width = x2d.shape
    dtype = x2d.dtype
    itemsize = jnp.dtype(dtype).itemsize
    sub = _min_sublane(dtype)
    row_bytes = width * itemsize

    # Number of grid steps: ~_TARGET_BLOCK_BYTES per block; at least 2 (and even)
    # when there is enough work so megacore (v7x) gets a balanced 2-TC split.
    g = max(pl.cdiv(rows * row_bytes, _TARGET_BLOCK_BYTES), 1)
    if rows >= 2 * sub:
        g = max(g, 2)
        if g % 2:
            g += 1
    tr = pl.cdiv(pl.cdiv(rows, g), sub) * sub
    tr = min(tr, rows)  # tiny arrays: full-extent block (always a legal block shape)
    grid = (pl.cdiv(rows, tr),)

    kernel = functools.partial(
        _sqrt_relu_kernel, compute_dtype=_compute_dtype_for(dtype)
    )
    extra = {}
    if donate_input:
        extra["input_output_aliases"] = {0: 0}

    return pl.pallas_call(
        kernel,
        out_shape=jax.ShapeDtypeStruct((rows, width), dtype),
        grid_spec=pltpu.PrefetchScalarGridSpec(
            num_scalar_prefetch=0,
            grid=grid,
            in_specs=[pl.BlockSpec((tr, width), lambda i: (i, 0))],
            out_specs=pl.BlockSpec((tr, width), lambda i: (i, 0)),
        ),
        compiler_params=pltpu.CompilerParams(
            dimension_semantics=("parallel",),
            vmem_limit_bytes=_VMEM_LIMIT_BYTES,
        ),
        **extra,
    )(x2d)


def myact_sqrt(x: jax.Array, *, donate_input: bool = False) -> jax.Array:
    """Elementwise sqrt(1 + relu(x)); matches torch.sqrt(1 + F.relu(x))."""
    orig_shape = x.shape
    dtype = x.dtype
    n = x.size
    if n == 0:
        return x

    # Widest lane-dense width that tiles n exactly (copy-free reshape, fewer
    # store/DMA descriptors); fall back down to 128.
    width = None
    for w in (1024, 512, 256, LANE):
        if n % w == 0:
            width = w
            break

    if width is not None:
        out2d = _run_lane_dense(x.reshape(n // width, width), donate_input=donate_input)
        return out2d.reshape(orig_shape)

    # n not a multiple of 128: run the kernel on the aligned prefix only and
    # handle the <128-element tail with a trivial jnp expression -- no
    # full-array pad copy and no full-array output slice.
    x_flat = x.reshape(-1)
    aligned = (n // LANE) * LANE
    cdt = _compute_dtype_for(dtype)
    parts = []
    if aligned:
        prefix2d = x_flat[:aligned].reshape(aligned // LANE, LANE)
        parts.append(_run_lane_dense(prefix2d).reshape(-1))
    tail = x_flat[aligned:]
    parts.append(jnp.sqrt(jnp.maximum(tail.astype(cdt), 0) + 1).astype(dtype))
    out_flat = parts[0] if len(parts) == 1 else jnp.concatenate(parts)
    return out_flat.reshape(orig_shape)


def _ref(x):
    return jnp.sqrt(1.0 + jnp.maximum(x.astype(jnp.float32), 0.0)).astype(x.dtype)


if __name__ == "__main__":
    key = jax.random.PRNGKey(0)
    k1, k2, k3, k4 = jax.random.split(key, 4)

    # 1) Small NCHW activation, 128-aligned size (copy-free lane-dense path).
    x1 = jax.random.normal(k1, (2, 4, 16, 16), dtype=jnp.float32)
    out1 = jax.block_until_ready(myact_sqrt(x1))
    assert out1.shape == x1.shape and out1.dtype == x1.dtype
    assert jnp.allclose(out1, _ref(x1), atol=1e-6, rtol=1e-6)

    # 2) Non-128-aligned size (aligned-prefix kernel + jnp tail, no pad copy).
    x2 = jax.random.normal(k2, (2, 3, 7, 5), dtype=jnp.float32)
    out2 = jax.block_until_ready(myact_sqrt(x2))
    assert out2.shape == x2.shape and out2.dtype == x2.dtype
    assert jnp.allclose(out2, _ref(x2), atol=1e-6, rtol=1e-6)

    # 3) bf16 input (native bf16 compute on v6e/v7x, f32 upcast elsewhere).
    x3 = jax.random.normal(k3, (2, 4, 16, 16), dtype=jnp.bfloat16)
    out3 = jax.block_until_ready(myact_sqrt(x3))
    assert out3.shape == x3.shape and out3.dtype == x3.dtype
    assert jnp.allclose(out3.astype(jnp.float32), _ref(x3).astype(jnp.float32),
                        atol=2e-2, rtol=2e-2)

    # 4) Slightly larger activation exercising a multi-step (even) parallel grid.
    x4 = jax.random.normal(k4, (2, 8, 32, 32), dtype=jnp.float32)
    out4 = jax.block_until_ready(myact_sqrt(x4))
    assert out4.shape == x4.shape and out4.dtype == x4.dtype
    assert jnp.allclose(out4, _ref(x4), atol=1e-6, rtol=1e-6)

    print("KERNEL_OK")
</pallas_src>

<mosaic_0001>
module attributes {stable_mosaic.version = 11 : i64} {
  func.func @_sqrt_relu_kernel(%arg0: i32, %arg1: memref<2x1024xf32, #tpu.memory_space<vmem>>, %arg2: memref<2x1024xf32, #tpu.memory_space<vmem>>) attributes {dimension_semantics = [#tpu.dimension_semantics<parallel>], iteration_bounds = array<i64: 1>, scalar_prefetch = 0 : i64, scratch_operands = 0 : i64, tpu.core_type = #tpu.core_type<tc>, window_params = [{transform_indices = @transform_0, window_bounds = array<i64: 2, 1024>}, {transform_indices = @transform_1, window_bounds = array<i64: 2, 1024>}]} {
    %c0 = arith.constant 0 : index
    %c0_0 = arith.constant 0 : index
    %0 = vector.load %arg1[%c0, %c0_0] : memref<2x1024xf32, #tpu.memory_space<vmem>>, vector<2x1024xf32>
    %cst = arith.constant 0.000000e+00 : f32
    %1 = vector.broadcast %cst : f32 to vector<2x1024xf32>
    %2 = arith.maximumf %0, %1 : vector<2x1024xf32>
    %cst_1 = arith.constant 1.000000e+00 : f32
    %3 = vector.broadcast %cst_1 : f32 to vector<2x1024xf32>
    %4 = arith.addf %2, %3 : vector<2x1024xf32>
    %5 = math.sqrt %4 : vector<2x1024xf32>
    %c0_2 = arith.constant 0 : index
    %c0_3 = arith.constant 0 : index
    %6 = vector.load %arg2[%c0_2, %c0_3] : memref<2x1024xf32, #tpu.memory_space<vmem>>, vector<2x1024xf32>
    tpu.vector_store %arg2[%c0_2, %c0_3], %5 {strides = array<i32>} : memref<2x1024xf32, #tpu.memory_space<vmem>>, vector<2x1024xf32>,
    return
  }
  func.func @transform_0(%arg0: i32) -> (i32, i32) {
    %c0_i32 = arith.constant 0 : i32
    %c0_i32_0 = arith.constant 0 : i32
    return %arg0, %c0_i32 : i32, i32
  }
  func.func @transform_1(%arg0: i32) -> (i32, i32) {
    %c0_i32 = arith.constant 0 : i32
    %c0_i32_0 = arith.constant 0 : i32
    return %arg0, %c0_i32 : i32, i32
  }
}

</mosaic_0001>

<bundles_post_ra>
// kernel: tpu_custom_call.1
= control target key start
LH: loop header
LB: loop body
LE: loop exit
PB: predicated region body
PF: predicated region fallthrough
CT: control target
= control target key end

     0   :  { %6 = vsyncpa [#allocation3], 0  ;;  %s148_s0 = inlined_call_operand.hbm [shape: f32[2,1024], index: 0, kind: input, shape index: {}]   ;;  %s149_s1 = inlined_call_operand.hbm [shape: f32[2,1024], index: 1, kind: output, shape index: {}]  }
   0x1   :  { %7 = vsyncpa [#allocation4], 0  ;;  %s13_s8 = sshll.u32 %s148_s0, 4  ;;  %s130_s9 = smov [#allocation2]   ;;  %s14_s8 = int_to_ptr.hbm [resolvable:$true] %s13_s8 }
   0x2   :  { %s15_s10 = sshll.u32 %s130_s9, 4  ;;  %s16_s10 = int_to_ptr.vmem [resolvable:$true] %s15_s10 }
   0x3   :  { %18 = dma.hbm_to_vmem [thread:$0]  %s14_s8, 256, %s16_s10, [#allocation3]  }
   0x4   :  { %126 = dma.done.wait [#allocation3], 256  }
   0x5   :  { %127 = vsyncadd [#allocation3], 4294967040  ;;  %v23_v0 = vld [vmem:[#allocation2] sm:$0xff]  ;;  %v24_v1 = vld [vmem:[#allocation2 + $0x8] sm:$0xff]  ;;  %s131_s0 = smov [#allocation5]   ;;  %s62_s14 = sshll.u32 %s149_s1, 4  ;;  %s63_s14 = int_to_ptr.hbm [resolvable:$true] %s62_s14 }
   0x6   :  { %v25_v2 = vmax.f32 %v23_v0, 0.0  ;;  %v26_v3 = vmax.f32 %v24_v1, 0.0  ;;  %s60_s11 = sshll.u32 %s131_s0, 4  ;;  %s61_s11 = int_to_ptr.vmem [resolvable:$true] %s60_s11 }
   0x8   :  { %v27_v4 = vadd.f32 1.0, %v25_v2  ;;  %v28_v5 = vadd.f32 1.0, %v26_v3 }
   0xa   :  { %74 = vrsqrt.f32 %v27_v4  ;;  %vm36_vm0 = vcmp.eq.f32.partialorder %v27_v4, inf  ;;  %v39_v17 = vand.u32 2147483648, %v27_v4  ;;  %vm38_vm1 = vcmp.eq.f32.partialorder %v27_v4, 0.0 }
   0xb   :  { %76 = vrsqrt.f32 %v28_v5  ;;  %vm48_vm2 = vcmp.eq.f32.partialorder %v28_v5, inf  ;;  %v51_v20 = vand.u32 2147483648, %v28_v5  ;;  %vm50_vm3 = vcmp.eq.f32.partialorder %v28_v5, 0.0 }
  0x10   :  { %v75_v6 = vpop.eup %74 }
  0x11   :  { %v77_v7 = vpop.eup %76  ;;  %v30_v8 = vmul.f32 %v75_v6, %v27_v4 }
  0x12   :  { %v42_v9 = vmul.f32 %v77_v7, %v28_v5 }
  0x13   :  { %v31_v10 = vmul.f32 %v75_v6, %v30_v8 }
  0x14   :  { %v43_v11 = vmul.f32 %v77_v7, %v42_v9 }
  0x15   :  { %v32_v12 = vmul.f32 0.5, %v31_v10 }
  0x16   :  { %v44_v13 = vmul.f32 0.5, %v43_v11 }
  0x17   :  { %v33_v14 = vsub.f32 1.5, %v32_v12 }
  0x18   :  { %v45_v15 = vsub.f32 1.5, %v44_v13 }
  0x19   :  { %v34_v16 = vmul.f32 %v75_v6, %v33_v14 }
  0x1a   :  { %v46_v18 = vmul.f32 %v77_v7, %v45_v15 }
  0x1b   :  { %v35_v19 = vmul.f32 %v34_v16, %v27_v4 }
  0x1c   :  { %v47_v21 = vmul.f32 %v46_v18, %v28_v5 }
  0x1d   :  { %v37_v22 = vsel %vm36_vm0, %v27_v4, %v35_v19 }
  0x1e   :  { %v40_v23 = vsel %vm38_vm1, %v39_v17, %v37_v22  ;;  %v49_v24 = vsel %vm48_vm2, %v28_v5, %v47_v21 }
  0x1f   :  { %53 = vst [vmem:[#allocation5] sm:$0xff] %v40_v23  ;;  %v52_v25 = vsel %vm50_vm3, %v51_v20, %v49_v24 }
  0x20   :  { %54 = vst [vmem:[#allocation5 + $0x8] sm:$0xff] %v52_v25 }
  0x21   :  { %65 = dma.vmem_to_hbm [thread:$0]  %s61_s11, 256, %s63_s14, [#allocation4]  }
  0x22   :  { %128 = dma.done.wait [#allocation4], 256  }
  0x23   :  { %129 = vsyncadd [#allocation4], 4294967040 }
  0x24   :  { %70 = vsyncpa [#allocation3], 1 }
  0x25   :  { %71 = vsyncpa [#allocation4], 1 }

</bundles_post_ra>
